<compile_context>
chip_gen: v6e
topology: v6e:2x2x1
jax: 0.10.0
libtpu: 0.0.40
codegen_flags: <defaults>
</compile_context>

<pallas_src>
import functools
import math

import jax
import jax.numpy as jnp
from jax.experimental import pallas as pl
from jax.experimental.pallas import tpu as pltpu


# ---------------------------------------------------------------------------
# Sinusoidal embedding (mirrors the PyTorch helper).
# ---------------------------------------------------------------------------
def timestep_embedding(timesteps, dim, max_period=10000):
    half = dim // 2
    freqs = jnp.exp(
        -math.log(max_period) * jnp.arange(half, dtype=jnp.float32) / half
    )
    args = timesteps[:, None].astype(jnp.float32) * freqs[None]
    emb = jnp.concatenate([jnp.cos(args), jnp.sin(args)], axis=-1)
    if dim % 2:
        emb = jnp.concatenate([emb, jnp.zeros_like(emb[:, :1])], axis=-1)
    return emb


# ---------------------------------------------------------------------------
# Pallas kernel: fused x_module -> (+pos+bx) -> Linear,SiLU,Linear -> out_module
# for one tile of TB batch rows (TM = TB * in_dim token rows, position-major).
# ---------------------------------------------------------------------------
def _toy_transformer_kernel(
    x_ref, posb_ref, wx_ref, w1_ref, b1_ref, w2_ref, b2_ref, wo_ref, bo_ref,
    out_ref, *, tb, in_dim, out_per,
):
    # x_module Linear(1, H) as broadcast outer product, fused with (+pos+bx).
    # Elementwise math stays f32 (v5e has no bf16 VPU/EUP path).
    h = x_ref[...] * wx_ref[...] + posb_ref[...]                       # (TM, H)

    # x_pos_module: Linear(H,H) -> SiLU -> Linear(H,H).
    # bf16 MXU operands, f32 accumulation; SiLU exp + reciprocal on the EUP.
    h1 = jnp.dot(h.astype(jnp.bfloat16), w1_ref[...],
                 preferred_element_type=jnp.float32) + b1_ref[...]
    h1 = h1 * pl.reciprocal(1.0 + jnp.exp(-h1), approx=True)           # SiLU
    h2 = jnp.dot(h1.astype(jnp.bfloat16), w2_ref[...],
                 preferred_element_type=jnp.float32) + b2_ref[...]

    # out_module: Linear(H, out_per) over all TM rows in one MXU matmul.
    y = jnp.dot(h2.astype(jnp.bfloat16), wo_ref[...],
                preferred_element_type=jnp.float32) + bo_ref[...]      # (TM, out_per)

    # Relayout (TM, out_per) position-major rows -> lane-dense (TB, in_dim*out_per)
    # output block.  Slices of y are sublane-aligned when TB % 8 == 0; the
    # per-position stores are narrow VMEM writes, but the HBM writeback of the
    # block is one dense slab.  (in_dim is small for this toy model, so the
    # static unroll is cheap.)
    for d in range(in_dim):
        out_ref[:, d * out_per:(d + 1) * out_per] = (
            y[d * tb:(d + 1) * tb, :].astype(out_ref.dtype))


# ---------------------------------------------------------------------------
# Tile selection: TB batch rows per grid step (TM = TB * in_dim token rows).
# ---------------------------------------------------------------------------
def _pick_batch_tile(batch, in_dim, target_rows=512):
    """TB divides batch and is a multiple of 8 (sublane rule) unless TB==batch.
    Cap TM near `target_rows` (v5e/v6e amortize ~0.35us/step at >=512 rows);
    prefer an even (>=2) number of grid steps so both v7x TensorCores work."""
    divisors = [d for d in range(1, batch + 1) if batch % d == 0]
    cands = [d for d in divisors if d % 8 == 0 or d == batch]
    capped = [d for d in cands if d * in_dim <= target_rows] or [min(cands)]
    tb = max(capped)
    steps = batch // tb
    if steps == 1:
        multi = [d for d in capped if (batch // d) >= 2 and (batch // d) % 2 == 0]
        if multi:
            tb = max(multi)
    elif steps % 2 == 1:
        even = [d for d in capped if (batch // d) % 2 == 0]
        if even:
            tb = max(even)
    return tb


def _vmem_capacity_bytes():
    try:
        return int(pltpu.get_tpu_info().vmem_capacity_bytes)
    except Exception:
        return 64 * 1024 * 1024   # conservative: v7x has 64 MiB per TensorCore


# ---------------------------------------------------------------------------
# One-time parameter preparation (bf16 weight casts hoisted out of the
# per-forward path; x_module bias folded into the positional table).
# ---------------------------------------------------------------------------
def prepare_params(params, in_dim):
    H = params["w1"].shape[0]
    pos = timestep_embedding(
        jnp.arange(in_dim, dtype=jnp.float32), H, max_period=in_dim
    )                                                        # (in_dim, H)
    return dict(
        pos_bias=(pos + params["bx"]).astype(jnp.float32),   # (in_dim, H)
        wx=params["wx"].astype(jnp.float32),                 # (1, H)
        w1=params["w1"].astype(jnp.bfloat16),
        b1=params["b1"].astype(jnp.float32),
        w2=params["w2"].astype(jnp.bfloat16),
        b2=params["b2"].astype(jnp.float32),
        wo=params["wo"].astype(jnp.bfloat16),
        bo=params["bo"].astype(jnp.float32),
    )


# ---------------------------------------------------------------------------
# Wrapper
# ---------------------------------------------------------------------------
def toy_transformer_forward(prepared, inputs, time=None):
    """inputs: (B, in_dim) f32; time: (B, 1) — unused by the returned value
    (dead in the reference forward), kept for interface fidelity."""
    del time  # dead w.r.t. the reference output (see NOTE above)
    B, in_dim = inputs.shape
    assert prepared["pos_bias"].shape[0] == in_dim
    H = prepared["w1"].shape[0]
    out_per = prepared["wo"].shape[1]
    out_dim = in_dim * out_per
    N = B * in_dim

    TB = _pick_batch_tile(B, in_dim)
    TM = TB * in_dim
    n_steps = B // TB

    # Position-major row order inside each batch tile (row r = d*TB + b_local):
    # lets the kernel write a lane-dense (TB, out_dim) block that is already
    # the final (B, out_dim) layout.  The input relayout is a tiny (N,) shuffle.
    x_perm = (inputs.astype(jnp.float32)
                    .reshape(n_steps, TB, in_dim)
                    .transpose(0, 2, 1)
                    .reshape(N, 1))

    # Grid-invariant (TM, H) tile: pos[d] + x_module bias, each repeated TB rows.
    posb = jnp.repeat(prepared["pos_bias"], TB, axis=0)       # (TM, H)

    # VMEM budget (bytes): single-buffered invariants + double-buffered x/out
    # + live f32 intermediates, with 2x margin; cap at 75% of physical VMEM.
    invariant = (TM * H * 4 + H * 4 + 2 * H * H * 2 + 2 * H * 4
                 + H * out_per * 2 + out_per * 4)
    streamed = 2 * (TM * 4 + TB * out_dim * 4)
    live = 6 * TM * H * 4
    need = invariant + streamed + live
    vmem_limit = min(int(0.75 * _vmem_capacity_bytes()),
                     max(2 * need + (8 << 20), 32 << 20))

    cost = pl.CostEstimate(
        flops=2 * N * H * (2 * H + out_per) + 6 * N * H,
        transcendentals=2 * N * H,
        bytes_accessed=invariant + N * 4 + B * out_dim * 4,
    )

    single = pl.Buffered(1)   # grid-invariant inputs: fetch once, no double buffer
    kernel = functools.partial(
        _toy_transformer_kernel, tb=TB, in_dim=in_dim, out_per=out_per)

    out = pl.pallas_call(
        kernel,
        out_shape=jax.ShapeDtypeStruct((B, out_dim), jnp.float32),
        grid=(n_steps,),
        in_specs=[
            pl.BlockSpec((TM, 1), lambda i: (i, 0)),                           # x (streamed)
            pl.BlockSpec((TM, H), lambda i: (0, 0), pipeline_mode=single),     # pos + bx
            pl.BlockSpec((1, H), lambda i: (0, 0), pipeline_mode=single),      # wx
            pl.BlockSpec((H, H), lambda i: (0, 0), pipeline_mode=single),      # w1 (bf16)
            pl.BlockSpec((1, H), lambda i: (0, 0), pipeline_mode=single),      # b1
            pl.BlockSpec((H, H), lambda i: (0, 0), pipeline_mode=single),      # w2 (bf16)
            pl.BlockSpec((1, H), lambda i: (0, 0), pipeline_mode=single),      # b2
            pl.BlockSpec((H, out_per), lambda i: (0, 0), pipeline_mode=single),# wo (bf16)
            pl.BlockSpec((1, out_per), lambda i: (0, 0), pipeline_mode=single),# bo
        ],
        out_specs=pl.BlockSpec((TB, out_dim), lambda i: (i, 0)),  # lane-dense slab
        compiler_params=pltpu.CompilerParams(
            dimension_semantics=("parallel",),
            vmem_limit_bytes=vmem_limit,
        ),
        cost_estimate=cost,
    )(x_perm, posb, prepared["wx"], prepared["w1"], prepared["b1"],
      prepared["w2"], prepared["b2"], prepared["wo"], prepared["bo"])
    return out   # already (B, in_dim*out_per), same order as PyTorch flatten(1, 2)


# ---------------------------------------------------------------------------
# Deterministic parameter init (PyTorch-Linear-style uniform; weights stored
# transposed as (in, out) for row-major (tokens, H) @ (H, out) matmuls).
# ---------------------------------------------------------------------------
def init_params(key, in_dim, hidden_dim, out_dim):
    assert out_dim % in_dim == 0
    out_per = out_dim // in_dim

    def linear(k, fan_in, fan_out):
        kw, kb = jax.random.split(k)
        bound = 1.0 / math.sqrt(fan_in)
        w = jax.random.uniform(kw, (fan_in, fan_out), jnp.float32, -bound, bound)
        b = jax.random.uniform(kb, (1, fan_out), jnp.float32, -bound, bound)
        return w, b

    ks = jax.random.split(key, 4)
    wx, bx = linear(ks[0], 1, hidden_dim)            # x_module: Linear(1, H)
    w1, b1 = linear(ks[1], hidden_dim, hidden_dim)   # x_pos_module[0]
    w2, b2 = linear(ks[2], hidden_dim, hidden_dim)   # x_pos_module[2]
    wo, bo = linear(ks[3], hidden_dim, out_per)      # out_module
    return dict(wx=wx, bx=bx, w1=w1, b1=b1, w2=w2, b2=b2, wo=wo, bo=bo)


# ---------------------------------------------------------------------------
# Pure-JAX reference (mirrors the effective PyTorch forward).
# bf16_matmuls=True applies the same mixed precision as the kernel (tight
# implementation check); False is the exact f32 forward (quantization bound).
# ---------------------------------------------------------------------------
def reference_forward(params, inputs, *, bf16_matmuls=False):
    B, in_dim = inputs.shape
    H = params["w1"].shape[0]
    cast = (lambda a: a.astype(jnp.bfloat16)) if bf16_matmuls else (lambda a: a)
    pos = timestep_embedding(
        jnp.arange(in_dim, dtype=jnp.float32), H, max_period=in_dim
    )
    x = inputs[..., None] * params["wx"][None] + params["bx"][None]   # (B,in_dim,H)
    h = x + pos[None]
    h1 = jnp.dot(cast(h), cast(params["w1"]),
                 preferred_element_type=jnp.float32) + params["b1"][None]
    h1 = h1 * jax.nn.sigmoid(h1)
    h2 = jnp.dot(cast(h1), cast(params["w2"]),
                 preferred_element_type=jnp.float32) + params["b2"][None]
    y = jnp.dot(cast(h2), cast(params["wo"]),
                preferred_element_type=jnp.float32) + params["bo"][None]
    return y.reshape(B, -1)


if __name__ == "__main__":
    # Small demo shapes (batch kept a multiple of 8 so the batch tile is
    # sublane-aligned).  hidden_dim=32 is toy-sized; see MXU note at the top.
    B, in_dim, hidden_dim, num_layers, out_dim = 8, 8, 32, 2, 16

    key = jax.random.PRNGKey(0)
    kp, kx, kt = jax.random.split(key, 3)
    params = init_params(kp, in_dim, hidden_dim, out_dim)
    prepared = prepare_params(params, in_dim)
    inputs = jax.random.normal(kx, (B, in_dim), dtype=jnp.float32)
    time = jax.random.uniform(kt, (B, 1), dtype=jnp.float32)

    fwd = jax.jit(toy_transformer_forward)
    out = jax.block_until_ready(fwd(prepared, inputs, time))
    assert out.shape == (B, out_dim), out.shape

    # Kernel-implementation check (same mixed precision as the kernel).
    ref_mixed = reference_forward(params, inputs, bf16_matmuls=True)
    err_impl = float(jnp.max(jnp.abs(out - ref_mixed)))
    # Semantic sanity check vs. the exact f32 forward (bf16 drift bound).
    ref_f32 = reference_forward(params, inputs, bf16_matmuls=False)
    err_quant = float(jnp.max(jnp.abs(out - ref_f32)))

    if err_impl < 3e-2 and err_quant < 8e-2:
        print("KERNEL_OK")
    else:
        print(f"MISMATCH err_impl={err_impl} err_quant={err_quant}")
</pallas_src>

<mosaic_0001>
module attributes {stable_mosaic.version = 11 : i64} {
  func.func @_toy_transformer_kernel(%arg0: i32, %arg1: memref<64x1xf32, #tpu.memory_space<vmem>>, %arg2: memref<64x32xf32, #tpu.memory_space<vmem>>, %arg3: memref<1x32xf32, #tpu.memory_space<vmem>>, %arg4: memref<32x32xbf16, #tpu.memory_space<vmem>>, %arg5: memref<1x32xf32, #tpu.memory_space<vmem>>, %arg6: memref<32x32xbf16, #tpu.memory_space<vmem>>, %arg7: memref<1x32xf32, #tpu.memory_space<vmem>>, %arg8: memref<32x2xbf16, #tpu.memory_space<vmem>>, %arg9: memref<1x2xf32, #tpu.memory_space<vmem>>, %arg10: memref<8x16xf32, #tpu.memory_space<vmem>>) attributes {dimension_semantics = [#tpu.dimension_semantics<parallel>], iteration_bounds = array<i64: 1>, scalar_prefetch = 0 : i64, scratch_operands = 0 : i64, tpu.core_type = #tpu.core_type<tc>, window_params = [{transform_indices = @transform_0, window_bounds = array<i64: 64, 1>}, {pipeline_mode = #tpu.pipeline_mode<synchronous>, transform_indices = @transform_1, window_bounds = array<i64: 64, 32>}, {pipeline_mode = #tpu.pipeline_mode<synchronous>, transform_indices = @transform_2, window_bounds = array<i64: 1, 32>}, {pipeline_mode = #tpu.pipeline_mode<synchronous>, transform_indices = @transform_3, window_bounds = array<i64: 32, 32>}, {pipeline_mode = #tpu.pipeline_mode<synchronous>, transform_indices = @transform_4, window_bounds = array<i64: 1, 32>}, {pipeline_mode = #tpu.pipeline_mode<synchronous>, transform_indices = @transform_5, window_bounds = array<i64: 32, 32>}, {pipeline_mode = #tpu.pipeline_mode<synchronous>, transform_indices = @transform_6, window_bounds = array<i64: 1, 32>}, {pipeline_mode = #tpu.pipeline_mode<synchronous>, transform_indices = @transform_7, window_bounds = array<i64: 32, 2>}, {pipeline_mode = #tpu.pipeline_mode<synchronous>, transform_indices = @transform_8, window_bounds = array<i64: 1, 2>}, {transform_indices = @transform_9, window_bounds = array<i64: 8, 16>}]} {
    %c0 = arith.constant 0 : index
    %c0_0 = arith.constant 0 : index
    %0 = vector.load %arg1[%c0, %c0_0] : memref<64x1xf32, #tpu.memory_space<vmem>>, vector<64x1xf32>
    %c0_1 = arith.constant 0 : index
    %c0_2 = arith.constant 0 : index
    %1 = vector.load %arg3[%c0_1, %c0_2] : memref<1x32xf32, #tpu.memory_space<vmem>>, vector<1x32xf32>
    %2 = vector.broadcast %0 : vector<64x1xf32> to vector<64x32xf32>
    %3 = vector.broadcast %1 : vector<1x32xf32> to vector<64x32xf32>
    %4 = arith.mulf %2, %3 : vector<64x32xf32>
    %c0_3 = arith.constant 0 : index
    %c0_4 = arith.constant 0 : index
    %5 = vector.load %arg2[%c0_3, %c0_4] : memref<64x32xf32, #tpu.memory_space<vmem>>, vector<64x32xf32>
    %6 = arith.addf %4, %5 : vector<64x32xf32>
    %7 = arith.truncf %6 : vector<64x32xf32> to vector<64x32xbf16>
    %c0_5 = arith.constant 0 : index
    %c0_6 = arith.constant 0 : index
    %8 = vector.load %arg4[%c0_5, %c0_6] : memref<32x32xbf16, #tpu.memory_space<vmem>>, vector<32x32xbf16>
    %cst = arith.constant dense<0.000000e+00> : vector<64x32xf32>
    %9 = tpu.matmul %7, %8, %cst {dimension_numbers = #tpu.dot_dimension_numbers<[1], [0], [0], [1], [0, 0, 1, 1], [], []>} : vector<64x32xbf16>, vector<32x32xbf16>, vector<64x32xf32> -> vector<64x32xf32>
    %c0_7 = arith.constant 0 : index
    %c0_8 = arith.constant 0 : index
    %10 = vector.load %arg5[%c0_7, %c0_8] : memref<1x32xf32, #tpu.memory_space<vmem>>, vector<1x32xf32>
    %11 = vector.broadcast %10 : vector<1x32xf32> to vector<64x32xf32>
    %12 = arith.addf %9, %11 : vector<64x32xf32>
    %cst_9 = arith.constant 0.000000e+00 : f32
    %13 = vector.broadcast %cst_9 : f32 to vector<64x32xf32>
    %14 = arith.subf %13, %12 : vector<64x32xf32>
    %15 = math.exp %14 : vector<64x32xf32>
    %cst_10 = arith.constant 1.000000e+00 : f32
    %16 = vector.broadcast %cst_10 : f32 to vector<64x32xf32>
    %17 = arith.addf %16, %15 : vector<64x32xf32>
    %18 = tpu.reciprocal %17 {approx = true} : vector<64x32xf32> -> vector<64x32xf32>
    %19 = arith.mulf %12, %18 : vector<64x32xf32>
    %20 = arith.truncf %19 : vector<64x32xf32> to vector<64x32xbf16>
    %c0_11 = arith.constant 0 : index
    %c0_12 = arith.constant 0 : index
    %21 = vector.load %arg6[%c0_11, %c0_12] : memref<32x32xbf16, #tpu.memory_space<vmem>>, vector<32x32xbf16>
    %cst_13 = arith.constant dense<0.000000e+00> : vector<64x32xf32>
    %22 = tpu.matmul %20, %21, %cst_13 {dimension_numbers = #tpu.dot_dimension_numbers<[1], [0], [0], [1], [0, 0, 1, 1], [], []>} : vector<64x32xbf16>, vector<32x32xbf16>, vector<64x32xf32> -> vector<64x32xf32>
    %c0_14 = arith.constant 0 : index
    %c0_15 = arith.constant 0 : index
    %23 = vector.load %arg7[%c0_14, %c0_15] : memref<1x32xf32, #tpu.memory_space<vmem>>, vector<1x32xf32>
    %24 = vector.broadcast %23 : vector<1x32xf32> to vector<64x32xf32>
    %25 = arith.addf %22, %24 : vector<64x32xf32>
    %26 = arith.truncf %25 : vector<64x32xf32> to vector<64x32xbf16>
    %c0_16 = arith.constant 0 : index
    %c0_17 = arith.constant 0 : index
    %27 = vector.load %arg8[%c0_16, %c0_17] : memref<32x2xbf16, #tpu.memory_space<vmem>>, vector<32x2xbf16>
    %cst_18 = arith.constant dense<0.000000e+00> : vector<64x2xf32>
    %28 = tpu.matmul %26, %27, %cst_18 {dimension_numbers = #tpu.dot_dimension_numbers<[1], [0], [0], [1], [0, 0, 1, 1], [], []>} : vector<64x32xbf16>, vector<32x2xbf16>, vector<64x2xf32> -> vector<64x2xf32>
    %c0_19 = arith.constant 0 : index
    %c0_20 = arith.constant 0 : index
    %29 = vector.load %arg9[%c0_19, %c0_20] : memref<1x2xf32, #tpu.memory_space<vmem>>, vector<1x2xf32>
    %30 = vector.broadcast %29 : vector<1x2xf32> to vector<64x2xf32>
    %31 = arith.addf %28, %30 : vector<64x2xf32>
    %32 = vector.extract_strided_slice %31 {offsets = [0, 0], sizes = [8, 2], strides = [1, 1]} : vector<64x2xf32> to vector<8x2xf32>
    %c0_21 = arith.constant 0 : index
    %c0_22 = arith.constant 0 : index
    %33 = vector.load %arg10[%c0_21, %c0_22] : memref<8x16xf32, #tpu.memory_space<vmem>>, vector<8x2xf32>
    tpu.vector_store %arg10[%c0_21, %c0_22], %32 {strides = array<i32>} : memref<8x16xf32, #tpu.memory_space<vmem>>, vector<8x2xf32>,
    %34 = vector.extract_strided_slice %31 {offsets = [8, 0], sizes = [8, 2], strides = [1, 1]} : vector<64x2xf32> to vector<8x2xf32>
    %c0_23 = arith.constant 0 : index
    %c2 = arith.constant 2 : index
    %35 = vector.load %arg10[%c0_23, %c2] : memref<8x16xf32, #tpu.memory_space<vmem>>, vector<8x2xf32>
    tpu.vector_store %arg10[%c0_23, %c2], %34 {strides = array<i32>} : memref<8x16xf32, #tpu.memory_space<vmem>>, vector<8x2xf32>,
    %36 = vector.extract_strided_slice %31 {offsets = [16, 0], sizes = [8, 2], strides = [1, 1]} : vector<64x2xf32> to vector<8x2xf32>
    %c0_24 = arith.constant 0 : index
    %c4 = arith.constant 4 : index
    %37 = vector.load %arg10[%c0_24, %c4] : memref<8x16xf32, #tpu.memory_space<vmem>>, vector<8x2xf32>
    tpu.vector_store %arg10[%c0_24, %c4], %36 {strides = array<i32>} : memref<8x16xf32, #tpu.memory_space<vmem>>, vector<8x2xf32>,
    %38 = vector.extract_strided_slice %31 {offsets = [24, 0], sizes = [8, 2], strides = [1, 1]} : vector<64x2xf32> to vector<8x2xf32>
    %c0_25 = arith.constant 0 : index
    %c6 = arith.constant 6 : index
    %39 = vector.load %arg10[%c0_25, %c6] : memref<8x16xf32, #tpu.memory_space<vmem>>, vector<8x2xf32>
    tpu.vector_store %arg10[%c0_25, %c6], %38 {strides = array<i32>} : memref<8x16xf32, #tpu.memory_space<vmem>>, vector<8x2xf32>,
    %40 = vector.extract_strided_slice %31 {offsets = [32, 0], sizes = [8, 2], strides = [1, 1]} : vector<64x2xf32> to vector<8x2xf32>
    %c0_26 = arith.constant 0 : index
    %c8 = arith.constant 8 : index
    %41 = vector.load %arg10[%c0_26, %c8] : memref<8x16xf32, #tpu.memory_space<vmem>>, vector<8x2xf32>
    tpu.vector_store %arg10[%c0_26, %c8], %40 {strides = array<i32>} : memref<8x16xf32, #tpu.memory_space<vmem>>, vector<8x2xf32>,
    %42 = vector.extract_strided_slice %31 {offsets = [40, 0], sizes = [8, 2], strides = [1, 1]} : vector<64x2xf32> to vector<8x2xf32>
    %c0_27 = arith.constant 0 : index
    %c10 = arith.constant 10 : index
    %43 = vector.load %arg10[%c0_27, %c10] : memref<8x16xf32, #tpu.memory_space<vmem>>, vector<8x2xf32>
    tpu.vector_store %arg10[%c0_27, %c10], %42 {strides = array<i32>} : memref<8x16xf32, #tpu.memory_space<vmem>>, vector<8x2xf32>,
    %44 = vector.extract_strided_slice %31 {offsets = [48, 0], sizes = [8, 2], strides = [1, 1]} : vector<64x2xf32> to vector<8x2xf32>
    %c0_28 = arith.constant 0 : index
    %c12 = arith.constant 12 : index
    %45 = vector.load %arg10[%c0_28, %c12] : memref<8x16xf32, #tpu.memory_space<vmem>>, vector<8x2xf32>
    tpu.vector_store %arg10[%c0_28, %c12], %44 {strides = array<i32>} : memref<8x16xf32, #tpu.memory_space<vmem>>, vector<8x2xf32>,
    %46 = vector.extract_strided_slice %31 {offsets = [56, 0], sizes = [8, 2], strides = [1, 1]} : vector<64x2xf32> to vector<8x2xf32>
    %c0_29 = arith.constant 0 : index
    %c14 = arith.constant 14 : index
    %47 = vector.load %arg10[%c0_29, %c14] : memref<8x16xf32, #tpu.memory_space<vmem>>, vector<8x2xf32>
    tpu.vector_store %arg10[%c0_29, %c14], %46 {strides = array<i32>} : memref<8x16xf32, #tpu.memory_space<vmem>>, vector<8x2xf32>,
    return
  }
  func.func @transform_0(%arg0: i32) -> (i32, i32) {
    %c0_i32 = arith.constant 0 : i32
    %c0_i32_0 = arith.constant 0 : i32
    return %arg0, %c0_i32 : i32, i32
  }
  func.func @transform_1(%arg0: i32) -> (i32, i32) {
    %c0_i32 = arith.constant 0 : i32
    %c0_i32_0 = arith.constant 0 : i32
    %c0_i32_1 = arith.constant 0 : i32
    return %c0_i32, %c0_i32_0 : i32, i32
  }
  func.func @transform_2(%arg0: i32) -> (i32, i32) {
    %c0_i32 = arith.constant 0 : i32
    %c0_i32_0 = arith.constant 0 : i32
    %c0_i32_1 = arith.constant 0 : i32
    return %c0_i32, %c0_i32_0 : i32, i32
  }
  func.func @transform_3(%arg0: i32) -> (i32, i32) {
    %c0_i32 = arith.constant 0 : i32
    %c0_i32_0 = arith.constant 0 : i32
    %c0_i32_1 = arith.constant 0 : i32
    return %c0_i32, %c0_i32_0 : i32, i32
  }
  func.func @transform_4(%arg0: i32) -> (i32, i32) {
    %c0_i32 = arith.constant 0 : i32
    %c0_i32_0 = arith.constant 0 : i32
    %c0_i32_1 = arith.constant 0 : i32
    return %c0_i32, %c0_i32_0 : i32, i32
  }
  func.func @transform_5(%arg0: i32) -> (i32, i32) {
    %c0_i32 = arith.constant 0 : i32
    %c0_i32_0 = arith.constant 0 : i32
    %c0_i32_1 = arith.constant 0 : i32
    return %c0_i32, %c0_i32_0 : i32, i32
  }
  func.func @transform_6(%arg0: i32) -> (i32, i32) {
    %c0_i32 = arith.constant 0 : i32
    %c0_i32_0 = arith.constant 0 : i32
    %c0_i32_1 = arith.constant 0 : i32
    return %c0_i32, %c0_i32_0 : i32, i32
  }
  func.func @transform_7(%arg0: i32) -> (i32, i32) {
    %c0_i32 = arith.constant 0 : i32
    %c0_i32_0 = arith.constant 0 : i32
    %c0_i32_1 = arith.constant 0 : i32
    return %c0_i32, %c0_i32_0 : i32, i32
  }
  func.func @transform_8(%arg0: i32) -> (i32, i32) {
    %c0_i32 = arith.constant 0 : i32
    %c0_i32_0 = arith.constant 0 : i32
    %c0_i32_1 = arith.constant 0 : i32
    return %c0_i32, %c0_i32_0 : i32, i32
  }
  func.func @transform_9(%arg0: i32) -> (i32, i32) {
    %c0_i32 = arith.constant 0 : i32
    %c0_i32_0 = arith.constant 0 : i32
    return %arg0, %c0_i32 : i32, i32
  }
}

</mosaic_0001>

<bundles_post_ra>
// kernel: toy_transformer_forward.1
= control target key start
LH: loop header
LB: loop body
LE: loop exit
PB: predicated region body
PF: predicated region fallthrough
CT: control target
= control target key end

     0   :  { %v683_v2 = vmov 0   ;;  %s847_s0 = inlined_call_operand.vmem [shape: f32[64,1], index: 0, kind: input, shape index: {}]   ;;  %s848_s1 = inlined_call_operand.vmem [shape: f32[64,32], index: 1, kind: input, shape index: {}]   ;;  %s849_s2 = inlined_call_operand.vmem [shape: f32[1,32], index: 2, kind: input, shape index: {}]   ;;  %s850_s3 = inlined_call_operand.vmem [shape: bf16[32,32], index: 3, kind: input, shape index: {}]   ;;  %s851_s4 = inlined_call_operand.vmem [shape: f32[1,32], index: 4, kind: input, shape index: {}]   ;;  %s852_s5 = inlined_call_operand.vmem [shape: bf16[32,32], index: 5, kind: input, shape index: {}]   ;;  %s853_s6 = inlined_call_operand.vmem [shape: f32[1,32], index: 6, kind: input, shape index: {}]   ;;  %s854_s7 = inlined_call_operand.vmem [shape: bf16[32,2], index: 7, kind: input, shape index: {}]   ;;  %s855_s8 = inlined_call_operand.vmem [shape: f32[1,2], index: 8, kind: input, shape index: {}]   ;;  %s856_s9 = inlined_call_operand.hbm [shape: f32[8,16], index: 9, kind: output, shape index: {}]  }
   0x1   :  { %v36_v0 = vld [vmem:[%s847_s0 + $0x10] sm:$0xff]  ;;  %v34_v1 = vld [vmem:[%s847_s0] sm:$0xff]  ;;  %622 = vset.pattern.permute.xlu1 %v683_v2  ;;  %621 = vset.pattern.permute.xlu0 %v683_v2  ;;  %v37_v3 = vld [vmem:[%s847_s0 + $0x18] sm:$0xff] }
   0x2   :  { %55 = vperm.xlu1 %622, %v36_v0   ;;  %45 = vperm.xlu0 %621, %v34_v1   ;;  %v35_v4 = vld [vmem:[%s847_s0 + $0x8] sm:$0xff]  ;;  %v624_v7 = vld [vmem:[%s850_s3] sm:$0xff]  }
   0x3   :  { %v623_v5 = vld [vmem:[%s850_s3 + $0x8] sm:$0xff]   ;;  %v38_v8 = vld [vmem:[%s847_s0 + $0x20] sm:$0xff] }
   0x4   :  { %v39_v6 = vld [vmem:[%s847_s0 + $0x28] sm:$0xff]  ;;  %572 = vmatprep.subr.bf16.mxu0 %v623_v5  ;;  %608 = vmatprep.subr.bf16.mxu1 %v623_v5 }
   0x5   :  { %573 = vmatpush3.bf16.msra.mxu0 %v623_v5  ;;  %610 = vmatpush3.bf16.msra.mxu1 %v623_v5 }
   0x6   :  { %60 = vperm.xlu1 %622, %v37_v3   ;;  %50 = vperm.xlu0 %621, %v35_v4  }
   0x7   :  { %574 = vmatprep.subr.bf16.mxu0 %v624_v7  ;;  %609 = vmatprep.subr.bf16.mxu1 %v624_v7 }
   0xa   :  { %70 = vperm.xlu1 %622, %v39_v6   ;;  %65 = vperm.xlu0 %621, %v38_v8  }
   0xb   :  { %14 = vsyncpa [#allocation3], 0  ;;  %v41_v9 = vld [vmem:[%s847_s0 + $0x38] sm:$0xff]  ;;  %v40_v10 = vld [vmem:[%s847_s0 + $0x30] sm:$0xff]  ;;  %575 = vmatpush3.bf16.msra.mxu0 %v624_v7  ;;  %611 = vmatpush3.bf16.msra.mxu1 %v624_v7  ;;  %vm140_vm0 = vcmask 261120   ;;  %vm474_vm1 = vcmask 15360  }
   0xc   :  { %v532_v11 = vld [vmem:[%s849_s2] ss:$0 sm:$0xff]  ;;  %v99_v14 = vld [vmem:[%s848_s1 + $0x10] sm:$0xff]  ;;  %v100_v18 = vld [vmem:[%s848_s1 + $0x18] sm:$0xff]  ;;  %s684_s10 = smov 4   ;;  %s685_s11 = smov 6  }
   0xd   :  { %v97_v17 = vld [vmem:[%s848_s1] sm:$0xff]  ;;  %v98_v20 = vld [vmem:[%s848_s1 + $0x8] sm:$0xff]  ;;  %v104_v38 = vld [vmem:[%s848_s1 + $0x38] sm:$0xff]  ;;  %s686_s12 = smov 2   ;;  %s688_s0 = smov 10   ;;  %vm480_vm2 = vcmask 31760  }
   0xe   :  { %80 = vperm.xlu1 %622, %v41_v9   ;;  %75 = vperm.xlu0 %621, %v40_v10   ;;  %v102_v28 = vld [vmem:[%s848_s1 + $0x28] sm:$0xff]  ;;  %v101_v30 = vld [vmem:[%s848_s1 + $0x20] sm:$0xff]  ;;  %v103_v40 = vld [vmem:[%s848_s1 + $0x30] sm:$0xff]  ;;  %s689_s13 = smov 12   ;;  %s690_s14 = smov 14   ;;  %vm486_vm3 = vcmask 48160  }
   0xf   :  { %v625_v48 = vld [vmem:[%s852_s5 + $0x8] sm:$0xff]   ;;  %v626_v49 = vld [vmem:[%s852_s5] sm:$0xff]   ;;  %vm492_vm4 = vcmask 64560   ;;  %vm498_vm5 = vcmask 80960   ;;  %vm504_vm6 = vcmask 97360   ;;  %vm510_vm7 = vcmask 113760  }
  0x10   :  { %584 = vmatprep.subr.bf16.mxu1 %v625_v48  ;;  %v533_v50 = vld [vmem:[%s851_s4] ss:$0 sm:$0xff]  ;;  %s691_s15 = smov [#allocation2]   ;;  %vm516_vm8 = vcmask 130160  }
  0x11   :  { %s524_s2 = sshll.u32 %s691_s15, 4  ;;  %s525_s2 = int_to_ptr.vmem [resolvable:$true] %s524_s2 }
  0x12   :  { %s661_s16 = scalar_lea.vmem %s525_s2, 128  ;;  %p666_p1 = scmp.lt.s32.totalorder %s525_s2, %s525_s2 }
  0x13   :  { %p662_p0 = scmp.ne.s32.totalorder %s525_s2, %s661_s16  ;;  %p667_p2 = scmp.lt.s32.totalorder %s661_s16, %s661_s16 }
  0x15   :  { %p668_p3 = por %p667_p2, %p666_p1 }
  0x17   :  { %p669_p4 = pnand %p668_p3, %p662_p0 }
  0x7d   :  { %v56_v12 = vpop.permute.xlu1 %55  ;;  %v46_v13 = vpop.permute.xlu0 %45 }
  0x7e   :  { %v91_v15 = vmul.f32 %v532_v11, %v56_v12  ;;  %v89_v16 = vmul.f32 %v532_v11, %v46_v13 }
  0x80   :  { %v107_v24 = vadd.f32 %v99_v14, %v91_v15  ;;  %v105_v25 = vadd.f32 %v97_v17, %v89_v16 }
  0x81   :  { %v61_v19 = vpop.permute.xlu1 %60  ;;  %v51_v21 = vpop.permute.xlu0 %50 }
  0x82   :  { %v92_v22 = vmul.f32 %v532_v11, %v61_v19  ;;  %v90_v23 = vmul.f32 %v532_v11, %v51_v21 }
  0x84   :  { %v108_v26 = vadd.f32 %v100_v18, %v92_v22  ;;  %v106_v27 = vadd.f32 %v98_v20, %v90_v23 }
  0x85   :  { %v71_v29 = vpop.permute.xlu1 %70  ;;  %v66_v31 = vpop.permute.xlu0 %65 }
  0x86   :  { %v114_v32 = vpack.c.bf16 %v108_v26, %v107_v24  ;;  %v94_v33 = vmul.f32 %v532_v11, %v71_v29  ;;  %v93_v34 = vmul.f32 %v532_v11, %v66_v31  ;;  %v113_v35 = vpack.c.bf16 %v106_v27, %v105_v25 }
  0x88   :  { %v110_v36 = vadd.f32 %v102_v28, %v94_v33  ;;  %v109_v37 = vadd.f32 %v101_v30, %v93_v34  ;;  %576 = vmatprep.mubr.msk.bf16.mxu0 %vm140_vm0, %v113_v35 }
  0x89   :  { %v81_v39 = vpop.permute.xlu1 %80  ;;  %577 = vmatmul.mubr.msk.bf16.vlgmr.msra.gmra.mxu0 %vm140_vm0, %v114_v32  ;;  %v76_v41 = vpop.permute.xlu0 %75 }
  0x8a   :  { %v96_v42 = vmul.f32 %v532_v11, %v81_v39  ;;  %v95_v43 = vmul.f32 %v532_v11, %v76_v41  ;;  %v115_v44 = vpack.c.bf16 %v110_v36, %v109_v37 }
  0x8c   :  { %v112_v45 = vadd.f32 %v104_v38, %v96_v42  ;;  %v111_v46 = vadd.f32 %v103_v40, %v95_v43  ;;  %580 = vmatprep.mubr.msk.bf16.mxu1 %vm140_vm0, %v115_v44 }
  0x8e   :  { %v116_v47 = vpack.c.bf16 %v112_v45, %v111_v46 }
  0x90   :  { %581 = vmatmul.mubr.msk.bf16.vlgmr.msra.gmra.mxu1 %vm140_vm0, %v116_v47 }
  0x91   :  { %585 = vmatpush3.bf16.msra.mxu1 %v625_v48 }
  0x92   :  { %586 = vmatprep.subr.bf16.mxu1 %v626_v49 }
  0x95   :  { %587 = vmatpush3.bf16.msra.mxu1 %v626_v49 }
 0x149   :  { %v578_v51 = vpop.f32.mrf.mxu0 }
 0x14a   :  { %v812_v52 = vadd.f32 %v578_v51, %v533_v50 }
 0x14b   :  { %v187_v53 = vpop.f32.mrf.mxu0 }
 0x14c   :  { %v220_v54 = vsub.f32 0.0, %v812_v52  ;;  %v815_v55 = vadd.f32 %v533_v50, %v187_v53 }
 0x14d   :  { %v579_v56 = vpop.f32.mrf.mxu0 }
 0x14e   :  { %v230_v57 = vmul.f32 1.442695, %v220_v54  ;;  %v218_v58 = vsub.f32 0.0, %v815_v55  ;;  %v199_v59 = vadd.f32 %v579_v56, %v533_v50  ;;  %v628_v56 = vld [vmem:[%s854_s7] sm:$0xff]  }
 0x14f   :  { %v190_v60 = vpop.f32.mrf.mxu0 }
 0x150   :  { %v226_v61 = vmul.f32 1.442695, %v218_v58  ;;  %v221_v62 = vsub.f32 0.0, %v199_v59  ;;  %v191_v63 = vadd.f32 %v533_v50, %v190_v60  ;;  %v582_v0 = vpop.f32.mrf.mxu1  ;;  %629 = vpow2.f32 %v230_v57  ;;  %v540_v60 = vld [vmem:[%s853_s6] ss:$0 sm:$0xff] }
 0x151   :  { %v818_v1 = vadd.f32 %v582_v0, %v533_v50 }
 0x152   :  { %631 = vpow2.f32 %v226_v61  ;;  %v232_v2 = vmul.f32 1.442695, %v221_v62  ;;  %v219_v3 = vsub.f32 0.0, %v191_v63  ;;  %v203_v4 = vpop.f32.mrf.mxu1 }
 0x153   :  { %v224_v5 = vsub.f32 0.0, %v818_v1  ;;  %v204_v6 = vadd.f32 %v533_v50, %v203_v4 }
 0x154   :  { %633 = vpow2.f32 %v232_v2  ;;  %v228_v7 = vmul.f32 1.442695, %v219_v3  ;;  %v583_v8 = vpop.f32.mrf.mxu1 }
 0x155   :  { %v238_v9 = vmul.f32 1.442695, %v224_v5  ;;  %v222_v10 = vsub.f32 0.0, %v204_v6  ;;  %v215_v11 = vadd.f32 %v583_v8, %v533_v50 }
 0x156   :  { %635 = vpow2.f32 %v228_v7  ;;  %v206_v12 = vpop.f32.mrf.mxu1 }
 0x157   :  { %v234_v13 = vmul.f32 1.442695, %v222_v10  ;;  %v225_v14 = vsub.f32 0.0, %v215_v11  ;;  %v207_v15 = vadd.f32 %v533_v50, %v206_v12  ;;  %637 = vpow2.f32 %v238_v9 }
 0x159   :  { %639 = vpow2.f32 %v234_v13  ;;  %v240_v16 = vmul.f32 1.442695, %v225_v14  ;;  %v223_v17 = vsub.f32 0.0, %v207_v15  ;;  %v547_v14 = vld [vmem:[%s855_s8] ss:$0 sm:$0xff]  ;;  %s687_s8 = smov 8  }
 0x15b   :  { %641 = vpow2.f32 %v240_v16  ;;  %v236_v18 = vmul.f32 1.442695, %v223_v17 }
 0x15d   :  { %643 = vpow2.f32 %v236_v18  ;;  %v630_v19 = vpop.eup %629 }
 0x15e   :  { %v244_v23 = vadd.f32 1.0, %v630_v19 }
 0x15f   :  { %v632_v20 = vpop.eup %631 }
 0x160   :  { %v242_v21 = vadd.f32 1.0, %v632_v20 }
 0x161   :  { %v634_v22 = vpop.eup %633 }
 0x162   :  { %v245_v24 = vadd.f32 1.0, %v634_v22  ;;  %645 = vrcp.f32 %v242_v21 }
 0x163   :  { %v636_v25 = vpop.eup %635 }
 0x164   :  { %647 = vrcp.f32 %v245_v24  ;;  %v243_v26 = vadd.f32 1.0, %v636_v25  ;;  %v638_v27 = vpop.eup %637 }
 0x165   :  { %649 = vrcp.f32 %v244_v23  ;;  %v248_v31 = vadd.f32 1.0, %v638_v27 }
 0x166   :  { %v640_v28 = vpop.eup %639  ;;  %651 = vrcp.f32 %v243_v26 }
 0x167   :  { %v246_v29 = vadd.f32 1.0, %v640_v28 }
 0x168   :  { %v642_v30 = vpop.eup %641 }
 0x169   :  { %v249_v32 = vadd.f32 1.0, %v642_v30  ;;  %653 = vrcp.f32 %v246_v29 }
 0x16a   :  { %v644_v33 = vpop.eup %643 }
 0x16b   :  { %655 = vrcp.f32 %v249_v32  ;;  %v247_v34 = vadd.f32 1.0, %v644_v33 }
 0x16c   :  { %657 = vrcp.f32 %v248_v31 }
 0x16d   :  { %659 = vrcp.f32 %v247_v34 }
 0x16f   :  { %v646_v35 = vpop.eup %645 }
 0x170   :  { %v258_v40 = vmul.f32 %v646_v35, %v815_v55 }
 0x171   :  { %v648_v36 = vpop.eup %647 }
 0x172   :  { %v650_v37 = vpop.eup %649  ;;  %v261_v39 = vmul.f32 %v648_v36, %v199_v59 }
 0x173   :  { %v652_v38 = vpop.eup %651  ;;  %v260_v42 = vmul.f32 %v650_v37, %v812_v52  ;;  %v627_v52 = vld [vmem:[%s854_s7 + $0x8] sm:$0xff]  }
 0x174   :  { %v259_v41 = vmul.f32 %v652_v38, %v191_v63  ;;  %596 = vmatprep.subr.bf16.mxu0 %v627_v52 }
 0x175   :  { %v267_v45 = vpack.c.bf16 %v261_v39, %v260_v42  ;;  %597 = vmatpush3.bf16.msra.mxu0 %v627_v52 }
 0x176   :  { %v266_v43 = vpack.c.bf16 %v259_v41, %v258_v40  ;;  %v654_v44 = vpop.eup %653  ;;  %598 = vmatprep.subr.bf16.mxu0 %v628_v56 }
 0x177   :  { %v262_v49 = vmul.f32 %v654_v44, %v204_v6 }
 0x178   :  { %v656_v46 = vpop.eup %655  ;;  %588 = vmatprep.mubr.msk.bf16.mxu1 %vm140_vm0, %v266_v43 }
 0x179   :  { %v658_v47 = vpop.eup %657  ;;  %589 = vmatmul.mubr.msk.bf16.vlgmr.msra.gmra.mxu1 %vm140_vm0, %v267_v45  ;;  %v265_v50 = vmul.f32 %v656_v46, %v215_v11  ;;  %599 = vmatpush3.bf16.msra.mxu0 %v628_v56 }
 0x17a   :  { %v660_v48 = vpop.eup %659  ;;  %v264_v53 = vmul.f32 %v658_v47, %v818_v1 }
 0x17b   :  { %v263_v51 = vmul.f32 %v660_v48, %v207_v15 }
 0x17c   :  { %v269_v55 = vpack.c.bf16 %v265_v50, %v264_v53 }
 0x17d   :  { %v268_v54 = vpack.c.bf16 %v263_v51, %v262_v49 }
 0x17f   :  { %592 = vmatprep.mubr.msk.bf16.mxu1 %vm140_vm0, %v268_v54 }
 0x181   :  { %593 = vmatmul.mubr.msk.bf16.gmra.mxu1 %vm140_vm0, %v269_v55 }
 0x239   :  { %v590_v57 = vpop.f32.mrf.mxu1 }
 0x23a   :  { %v348_v1 = vadd.f32 %v590_v57, %v540_v60 }
 0x23b   :  { %v339_v58 = vpop.f32.mrf.mxu1 }
 0x23c   :  { %v340_v63 = vadd.f32 %v540_v60, %v339_v58 }
 0x23d   :  { %v591_v59 = vpop.f32.mrf.mxu1 }
 0x23e   :  { %v351_v61 = vadd.f32 %v591_v59, %v540_v60 }
 0x23f   :  { %v342_v62 = vpop.f32.mrf.mxu1 }
 0x240   :  { %v343_v0 = vadd.f32 %v540_v60, %v342_v62  ;;  %v371_v4 = vpack.c.bf16 %v351_v61, %v348_v1 }
 0x241   :  { %v594_v2 = vpop.f32.mrf.mxu1 }
 0x242   :  { %v370_v3 = vpack.c.bf16 %v343_v0, %v340_v63  ;;  %v364_v11 = vadd.f32 %v594_v2, %v540_v60 }
 0x243   :  { %v355_v5 = vpop.f32.mrf.mxu1 }
 0x244   :  { %600 = vmatprep.mubr.msk.bf16.mxu0 %vm140_vm0, %v370_v3  ;;  %v356_v9 = vadd.f32 %v540_v60, %v355_v5 }
 0x245   :  { %v595_v6 = vpop.f32.mrf.mxu1  ;;  %601 = vmatmul.mubr.msk.bf16.vlgmr.msra.gmra.mxu0 %vm140_vm0, %v371_v4 }
 0x246   :  { %v367_v7 = vadd.f32 %v595_v6, %v540_v60 }
 0x247   :  { %v358_v8 = vpop.f32.mrf.mxu1 }
 0x248   :  { %v359_v10 = vadd.f32 %v540_v60, %v358_v8  ;;  %v373_v13 = vpack.c.bf16 %v367_v7, %v364_v11 }
 0x24a   :  { %v372_v12 = vpack.c.bf16 %v359_v10, %v356_v9 }
 0x24c   :  { %604 = vmatprep.mubr.msk.bf16.mxu0 %vm140_vm0, %v372_v12 }
 0x24d   :  { %605 = vmatmul.mubr.msk.bf16.gmra.mxu0 %vm140_vm0, %v373_v13 }
 0x305   :  { %v602_v15 = vpop.f32.mrf.mxu0 }
 0x306   :  { %v452_v16 = vadd.f32 %v602_v15, %v547_v14 }
 0x307   :  { %v443_v17 = vpop.f32.mrf.mxu0 }
 0x308   :  { %v444_v18 = vadd.f32 %v547_v14, %v443_v17  ;;  %483 = vrot.lane.b32.xlu1 %v452_v16, %s684_s10 }
 0x309   :  { %v603_v19 = vpop.f32.mrf.mxu0 }
 0x30a   :  { %475 = vst.msk [vmem:[#allocation2] sm:$0xff] %vm474_vm1, %v444_v18  ;;  %v455_v20 = vadd.f32 %v603_v19, %v547_v14 }
 0x30b   :  { %v446_v21 = vpop.f32.mrf.mxu0 }
 0x30c   :  { %489 = vrot.lane.b32.xlu0 %v455_v20, %s685_s11  ;;  %v447_v23 = vadd.f32 %v547_v14, %v446_v21 }
 0x30d   :  { %v606_v22 = vpop.f32.mrf.mxu0 }
 0x30e   :  { %v468_v28 = vadd.f32 %v606_v22, %v547_v14 }
 0x30f   :  { %v459_v24 = vpop.f32.mrf.mxu0 }
 0x310   :  { %v460_v25 = vadd.f32 %v547_v14, %v459_v24  ;;  %477 = vrot.lane.b32.xlu0 %v447_v23, %s686_s12 }
 0x311   :  { %v607_v26 = vpop.f32.mrf.mxu0 }
 0x312   :  { %495 = vrot.lane.b32.xlu1 %v460_v25, %s687_s8  ;;  %v471_v30 = vadd.f32 %v607_v26, %v547_v14 }
 0x313   :  { %v462_v27 = vpop.f32.mrf.mxu0 }
 0x314   :  { %v463_v29 = vadd.f32 %v547_v14, %v462_v27 }
 0x316   :  { %501 = vrot.lane.b32.xlu0 %v463_v29, %s688_s0  ;;  %507 = vrot.lane.b32.xlu1 %v468_v28, %s689_s13 }
 0x31a   :  { %513 = vrot.lane.b32.xlu0 %v471_v30, %s690_s14 }
 0x37a   :  { %v484_v32 = vpop.permute.xlu1 %483 }
 0x37e   :  { %v490_v31 = vpop.permute.xlu0 %489 }
 0x382   :  { %v478_v33 = vpop.permute.xlu0 %477 }
 0x383   :  { %481 = vst.msk [vmem:[#allocation2] sm:$0xff] %vm480_vm2, %v478_v33 }
 0x384   :  { %487 = vst.msk [vmem:[#allocation2] sm:$0xff] %vm486_vm3, %v484_v32  ;;  %v496_v34 = vpop.permute.xlu1 %495 }
 0x385   :  { %493 = vst.msk [vmem:[#allocation2] sm:$0xff] %vm492_vm4, %v490_v31 }
 0x386   :  { %499 = vst.msk [vmem:[#allocation2] sm:$0xff] %vm498_vm5, %v496_v34 }
 0x388   :  { %v502_v35 = vpop.permute.xlu0 %501  ;;  %v508_v36 = vpop.permute.xlu1 %507 }
 0x389   :  { %505 = vst.msk [vmem:[#allocation2] sm:$0xff] %vm504_vm6, %v502_v35 }
 0x38a   :  { %511 = vst.msk [vmem:[#allocation2] sm:$0xff] %vm510_vm7, %v508_v36 }
 0x38c   :  { %v514_v37 = vpop.permute.xlu0 %513 }
 0x38d   :  { %517 = vst.msk [vmem:[#allocation2] sm:$0xff] %vm516_vm8, %v514_v37 }
 0x38e   :  { %672 = shalt.err (!%p669_p4)
}
 0x38f   :  { %527 = dma.vmem_to_hbm [thread:$0]  %s525_s2, 128, %s856_s9, [#allocation3]  }
 0x390   :  { %681 = dma.done.wait [#allocation3], 128  }
 0x391   :  { %682 = vsyncadd [#allocation3], 4294967168 }
 0x392   :  { %531 = vsyncpa [#allocation3], 1 }

</bundles_post_ra>
